<compile_context>
chip_gen: v7x
topology: tpu7x:2x2x1
jax: 0.10.0
libtpu: 0.0.40
codegen_flags: <defaults>
</compile_context>

<pallas_src>
import functools

import jax
import jax.numpy as jnp
import numpy as np
from jax.experimental import pallas as pl
from jax.experimental.pallas import tpu as pltpu

ANCHORS_NP = np.array(
    [(1.3221, 1.73145), (3.19275, 4.00944), (5.05587, 8.09892),
     (9.47112, 4.84053), (11.2364, 10.0071)], dtype=np.float32)
ANCHORS = jnp.asarray(ANCHORS_NP)
NUM_ANCHORS = ANCHORS_NP.shape[0]


def _round_up(x, m):
  return ((x + m - 1) // m) * m


# ----------------------------------------------------------------------------
# Pallas kernel: anchors + IoU + three masked-MSE partial sums (weighted)
# ----------------------------------------------------------------------------
def _make_loss_kernel(num_classes, tnc, n_inner, n_real, hw_a, batch,
                      w_bbox, w_iou, w_cls, anchors):
  C = int(num_classes)
  B = int(batch)
  nwords = (C + 31) // 32
  aw_c = [float(v) for v in anchors[:, 0]]
  ah_c = [float(v) for v in anchors[:, 1]]
  w_bbox = float(w_bbox)
  w_iou = float(w_iou)
  w_cls = float(w_cls)
  n_real = int(n_real)
  hw_a = int(hw_a)
  tnc_m5 = float(tnc % 5)

  def fmod5(x):  # exact for small-magnitude f32 arguments (used <= ~2^14)
    return x - 5.0 * jnp.floor(x / 5.0)

  def kernel(bits_ref, bboxp_ref, tgt_ref, ioup_ref, probp_ref, out_ref):
    o = pl.program_id(0)
    i = pl.program_id(1)

    # Output tile (same block index over the inner axis) is the accumulator.
    @pl.when(i == 0)
    def _():
      out_ref[...] = jnp.zeros_like(out_ref)

    def grp(ref, g):  # component group g -> full (8, tnc) vreg tile
      return ref[g * 8:(g + 1) * 8, :]

    px, py, pwr, phr = (grp(bboxp_ref, g) for g in range(4))   # raw bbox_pred
    bx, by, bw, bh, bm = (grp(tgt_ref, g) for g in range(5))   # built target
    ip = ioup_ref[...]                                          # iou_pred

    # Flat box index (int32, exact): n = (step*tnc + col)*8 + sub
    step = o * n_inner + i
    col = jax.lax.broadcasted_iota(jnp.int32, (8, tnc), 1)
    sub = jax.lax.broadcasted_iota(jnp.int32, (8, tnc), 0)
    nflat = (step * tnc + col) * 8 + sub
    valid = nflat < n_real                      # padded boxes -> contributions 0

    # Anchor id = nflat % 5, via small-magnitude exact f32 modular arithmetic.
    step_f = (o * n_inner + i).astype(jnp.float32)
    col_f = col.astype(jnp.float32)
    sub_f = sub.astype(jnp.float32)
    ct_m5 = fmod5(fmod5(step_f) * tnc_m5 + col_f)   # (step*tnc + col) % 5
    a_id = fmod5(3.0 * ct_m5 + sub_f)               # (8*col_total + sub) % 5

    m0 = a_id < 0.5
    m1 = a_id < 1.5
    m2 = a_id < 2.5
    m3 = a_id < 3.5

    def pick(v):  # reuse the four comparisons for both w and h anchors
      return jnp.where(m0, v[0], jnp.where(m1, v[1], jnp.where(
          m2, v[2], jnp.where(m3, v[3], v[4]))))

    aw = pick(aw_c)
    ah = pick(ah_c)

    pw = jnp.sqrt(pwr * aw)                     # apply_anchors_to_bbox
    ph = jnp.sqrt(phr * ah)

    # bbox loss partial (bbox_mask is exactly 0/1 -> (p*m - t*m) == (p - t)*m)
    d0 = (px - bx) * bm
    d1 = (py - by) * bm
    d2 = (pw - bw) * bm
    d3 = (ph - bh) * bm
    pb = d0 * d0 + d1 * d1 + d2 * d2 + d3 * d3

    # IoU between anchor-applied prediction and built target
    b1x2 = px + pw
    b1y2 = py + ph
    b2x2 = bx + bw
    b2y2 = by + bh
    areas1 = pw * ph
    areas2 = bw * bh
    iw = jnp.maximum(jnp.minimum(b1x2, b2x2) - jnp.maximum(px, bx), 0.0)
    ih = jnp.maximum(jnp.minimum(b1y2, b2y2) - jnp.maximum(py, by), 0.0)
    inter = iw * ih
    denom = areas1 + areas2 - inter
    denom = jnp.where(valid, denom, 1.0)        # no 0*inf NaN on padded lanes
    iou_built = jnp.where(valid,
                          inter * pl.reciprocal(denom, approx=False), 0.0)

    im = 0.5 + 0.5 * bm                         # iou_mask derived in-kernel
    di = (ip - iou_built) * im
    pi = di * di

    # Class loss: per-lane class bitmask word(s) looked up from SMEM (the
    # reference's broadcast assignment makes the class target bm * has_class).
    words = [jnp.zeros((8, tnc), jnp.int32) for _ in range(nwords)]
    for b in range(B):
      in_b = (nflat >= b * hw_a) & (nflat < (b + 1) * hw_a)
      for w in range(nwords):
        words[w] = jnp.where(in_b, bits_ref[b * nwords + w], words[w])

    pc = jnp.zeros((8, tnc), jnp.float32)
    for c in range(C):                          # static unroll over classes
      bit = 1 << (c % 32)
      if bit >= 2 ** 31:
        bit -= 2 ** 32
      hc = ((words[c // 32] & bit) != 0).astype(jnp.float32)
      dc = (grp(probp_ref, c) - hc) * bm
      pc = pc + dc * dc

    out_ref[...] += w_bbox * pb + w_iou * pi + w_cls * pc

  return kernel


# ----------------------------------------------------------------------------
# Target building: scatter DIRECTLY into the folded component-major layout
# (data-dependent scatter stays as tiny XLA glue; no transpose pass needed).
# ----------------------------------------------------------------------------
def build_targets_folded(bbox_gt, cls_gt, outsize, num_classes, hw, ncol):
  B, nb, _ = bbox_gt.shape
  A = NUM_ANCHORS
  C = int(num_classes)

  # find_best_ratio
  ra = ANCHORS[:, 0] / ANCHORS[:, 1]                         # (A,)
  rb = bbox_gt[..., 2] / bbox_gt[..., 3]                     # (B, nb)
  best = jnp.argmin(jnp.abs(ra[None, :, None] - rb[:, None, :]),
                    axis=1).astype(jnp.int32)                # (B, nb)

  cx = bbox_gt[..., 0] * outsize[0]
  cy = bbox_gt[..., 1] * outsize[1]
  cell = (jnp.floor(cy) * outsize[0] + jnp.floor(cx)).astype(jnp.int32)
  cxf = cx - jnp.floor(cx)
  cyf = cy - jnp.floor(cy)

  boff = jnp.arange(B, dtype=jnp.int32)[:, None] * (hw * A)
  nflat = boff + cell * A + best                             # (B, nb)
  col = nflat // 8
  sub = nflat % 8

  vals = jnp.stack([cxf, cyf,
                    jnp.sqrt(bbox_gt[..., 2]), jnp.sqrt(bbox_gt[..., 3]),
                    jnp.ones_like(cxf)], axis=0).astype(jnp.float32)  # (5,B,nb)

  tgt = jnp.zeros((5, 8, ncol), jnp.float32)
  g = jnp.arange(5, dtype=jnp.int32)[:, None, None]
  tgt = tgt.at[g, sub[None], col[None]].set(vals)
  tgt = tgt.reshape(5 * 8, ncol)

  # Per-image class presence -> int32 bitmask words (+ f32 table for reference)
  cls_ids = cls_gt[..., 0].astype(jnp.int32)                 # (B, nb)
  has = (cls_ids[:, :, None] ==
         jnp.arange(C, dtype=jnp.int32)[None, None, :]).any(axis=1)   # (B, C)
  nwords = (C + 31) // 32
  has_p = jnp.pad(has, ((0, 0), (0, nwords * 32 - C))).astype(jnp.int32)
  shifts = jnp.arange(32, dtype=jnp.int32)
  words = jnp.sum(has_p.reshape(B, nwords, 32) << shifts[None, None, :],
                  axis=-1, dtype=jnp.int32)                  # (B, nwords)
  return tgt, words.reshape(-1).astype(jnp.int32), has.astype(jnp.float32)


def _fold_pred(x, c, n, n_pad, ncol):
  """(B,HW,A,c) prediction -> component-major (c*8, ncol) folded slab."""
  x = x.reshape(n, c).astype(jnp.float32)
  x = jnp.pad(x, ((0, n_pad - n), (0, 0)))
  return x.reshape(ncol, 8, c).transpose(2, 1, 0).reshape(c * 8, ncol)


def _unfold_targets(tgt_f, n, B, HW, A):
  ncol = tgt_f.shape[1]
  t = tgt_f.reshape(5, 8, ncol).transpose(2, 1, 0).reshape(ncol * 8, 5)[:n]
  bbox_built = t[:, :4].reshape(B, HW, A, 4)
  bbox_mask = t[:, 4:5].reshape(B, HW, A, 1)
  return bbox_built, bbox_mask


# ----------------------------------------------------------------------------
# Wrapper
# ----------------------------------------------------------------------------
def yolo_v2_loss(bbox_pred, iou_pred, prob_pred, bbox_gt, cls_gt,
                 *, num_classes, outsize=(13, 13), lane_block=2048):
  B, HW, A, _ = bbox_pred.shape
  C = int(num_classes)
  assert HW == outsize[0] * outsize[1] and A == NUM_ANCHORS

  n = B * HW * A
  hw_a = HW * A
  K_in = 10 + C                       # component groups DMA'd per step

  # ---- tile selection: big lane-dense tiles, minimal padding, VMEM-capped --
  vmem_budget = 24 * 1024 * 1024      # conservative for v7x (64 MiB physical)
  max_tnc = max(128, (vmem_budget // (K_in * 8 * 4 * 2)) // 128 * 128)
  lane_block = max(128, min(int(lane_block), max_tnc))

  ncol_need = pl.cdiv(n, 8)
  if ncol_need < 256:
    g_outer, n_inner = 1, 1
    tnc = _round_up(ncol_need, 128)
  else:
    g_outer = 2                       # both v7x TensorCores; ~free on v5e/v6e
    blocks = max(2, pl.cdiv(ncol_need, lane_block))
    blocks = _round_up(blocks, g_outer)
    tnc = _round_up(pl.cdiv(ncol_need, blocks), 128)
    n_inner = blocks // g_outer
  ncol = g_outer * n_inner * tnc
  n_pad = ncol * 8

  # ---- targets (scattered directly into folded layout) + class bitmask -----
  tgt_f, cls_bits, _has = build_targets_folded(
      bbox_gt, cls_gt, outsize, C, HW, ncol)

  # ---- predictions: one fold each (single pad+transpose copy per tensor) ---
  bboxp_f = _fold_pred(bbox_pred, 4, n, n_pad, ncol)
  ioup_f = _fold_pred(iou_pred, 1, n, n_pad, ncol)
  probp_f = _fold_pred(prob_pred, C, n, n_pad, ncol)

  kernel = _make_loss_kernel(
      num_classes=C, tnc=tnc, n_inner=n_inner, n_real=n, hw_a=hw_a, batch=B,
      w_bbox=5.0 / (4.0 * n), w_iou=1.0 / n, w_cls=1.0 / (n * C),
      anchors=ANCHORS_NP)

  def col_map(o, i, bits):
    return (0, o * n_inner + i)

  vmem_need = 2 * K_in * 8 * tnc * 4 + g_outer * 8 * tnc * 4
  vmem_limit = int(min(max(vmem_need * 2, 8 << 20), 48 << 20))

  out = pl.pallas_call(
      kernel,
      out_shape=jax.ShapeDtypeStruct((g_outer * 8, tnc), jnp.float32),
      grid_spec=pltpu.PrefetchScalarGridSpec(
          num_scalar_prefetch=1,
          grid=(g_outer, n_inner),
          in_specs=[pl.BlockSpec((4 * 8, tnc), col_map),
                    pl.BlockSpec((5 * 8, tnc), col_map),
                    pl.BlockSpec((1 * 8, tnc), col_map),
                    pl.BlockSpec((C * 8, tnc), col_map)],
          out_specs=pl.BlockSpec((8, tnc), lambda o, i, bits: (o, 0)),
      ),
      compiler_params=pltpu.CompilerParams(
          dimension_semantics=("parallel", "arbitrary"),
          vmem_limit_bytes=vmem_limit),
  )(cls_bits, bboxp_f, tgt_f, ioup_f, probp_f)
  return jnp.sum(out)


# ----------------------------------------------------------------------------
# Pure-JAX reference (mirrors the PyTorch forward) for verification
# ----------------------------------------------------------------------------
def _ref_iou(b1, b2):
  b1x1, b1y1 = b1[:, 0:1], b1[:, 1:2]
  b1x2, b1y2 = b1[:, 0:1] + b1[:, 2:3], b1[:, 1:2] + b1[:, 3:4]
  b2x1, b2y1 = b2[:, 0:1], b2[:, 1:2]
  b2x2, b2y2 = b2[:, 0:1] + b2[:, 2:3], b2[:, 1:2] + b2[:, 3:4]
  a1 = (b1x2 - b1x1) * (b1y2 - b1y1)
  a2 = (b2x2 - b2x1) * (b2y2 - b2y1)
  iw = jnp.maximum(jnp.minimum(b1x2, b2x2) - jnp.maximum(b1x1, b2x1), 0.0)
  ih = jnp.maximum(jnp.minimum(b1y2, b2y2) - jnp.maximum(b1y1, b2y1), 0.0)
  inter = iw * ih
  return inter / (a1 + a2 - inter)


def reference_loss(bbox_pred, iou_pred, prob_pred, bbox_built, bbox_mask,
                   has_class):
  B, HW, A, _ = bbox_pred.shape
  aw = ANCHORS[:, 0].reshape(-1, 1)
  ah = ANCHORS[:, 1].reshape(-1, 1)
  bp = bbox_pred
  bp = bp.at[..., 2:3].set(jnp.sqrt(bbox_pred[..., 2:3] * aw))
  bp = bp.at[..., 3:4].set(jnp.sqrt(bbox_pred[..., 3:4] * ah))

  iou_built = _ref_iou(bp.reshape(-1, 4),
                       bbox_built.reshape(-1, 4)).reshape(B, HW, A, 1)
  iou_mask = 0.5 + 0.5 * bbox_mask
  cls_mask = bbox_mask
  cls_built = bbox_mask * has_class[:, None, None, :]

  bbox_loss = jnp.mean((bp * bbox_mask - bbox_built * bbox_mask) ** 2)
  iou_loss = jnp.mean((iou_pred * iou_mask - iou_built * iou_mask) ** 2)
  cls_loss = jnp.mean((prob_pred * cls_mask - cls_built * cls_mask) ** 2)
  return bbox_loss * 5 + iou_loss + cls_loss


if __name__ == "__main__":
  num_classes = 3
  outsize = (4, 4)                    # small grid for the test
  B, A = 2, NUM_ANCHORS
  HW = outsize[0] * outsize[1]

  key = jax.random.PRNGKey(0)
  k1, k2, k3 = jax.random.split(key, 3)
  bbox_pred = jax.random.uniform(k1, (B, HW, A, 4), jnp.float32, 0.05, 0.95)
  iou_pred = jax.random.uniform(k2, (B, HW, A, 1), jnp.float32)
  prob_pred = jax.random.uniform(k3, (B, HW, A, num_classes), jnp.float32)
  # GT boxes placed in distinct cells (deterministic, collision-free scatters)
  bbox_gt = jnp.array([[[0.12, 0.12, 0.20, 0.30],
                        [0.40, 0.12, 0.45, 0.25],
                        [0.12, 0.62, 0.30, 0.55],
                        [0.70, 0.70, 0.60, 0.20]],
                       [[0.30, 0.30, 0.15, 0.15],
                        [0.80, 0.10, 0.50, 0.60],
                        [0.10, 0.85, 0.25, 0.40],
                        [0.60, 0.55, 0.35, 0.35]]], jnp.float32)
  cls_gt = jnp.array([[[0], [2], [1], [2]],
                      [[1], [0], [2], [2]]], jnp.int32)

  loss_fn = jax.jit(functools.partial(
      yolo_v2_loss, num_classes=num_classes, outsize=outsize))
  loss = jax.block_until_ready(
      loss_fn(bbox_pred, iou_pred, prob_pred, bbox_gt, cls_gt))

  # Pure-JAX reference, sharing the same folded targets (so the check tests
  # the kernel math rather than scatter tie-breaking).
  n = B * HW * A
  ncol = _round_up(pl.cdiv(n, 8), 128)
  tgt_f, _bits, has_class = build_targets_folded(
      bbox_gt, cls_gt, outsize, num_classes, HW, ncol)
  bbox_built, bbox_mask = _unfold_targets(tgt_f, n, B, HW, A)
  ref = reference_loss(bbox_pred, iou_pred, prob_pred, bbox_built, bbox_mask,
                       has_class)

  np.testing.assert_allclose(np.asarray(loss), np.asarray(ref),
                             rtol=1e-5, atol=1e-6)
  print("KERNEL_OK")
</pallas_src>

<mosaic_0001>
module attributes {stable_mosaic.version = 11 : i64} {
  func.func @kernel(%arg0: i32, %arg1: i32, %arg2: memref<2xi32, #tpu.memory_space<smem>>, %arg3: memref<32x128xf32, #tpu.memory_space<vmem>>, %arg4: memref<40x128xf32, #tpu.memory_space<vmem>>, %arg5: memref<8x128xf32, #tpu.memory_space<vmem>>, %arg6: memref<24x128xf32, #tpu.memory_space<vmem>>, %arg7: memref<8x128xf32, #tpu.memory_space<vmem>>) attributes {dimension_semantics = [#tpu.dimension_semantics<parallel>, #tpu.dimension_semantics<arbitrary>], iteration_bounds = array<i64: 1, 1>, scalar_prefetch = 1 : i64, scratch_operands = 0 : i64, tpu.core_type = #tpu.core_type<tc>, window_params = [{transform_indices = @transform_0, window_bounds = array<i64: 32, 128>}, {transform_indices = @transform_1, window_bounds = array<i64: 40, 128>}, {transform_indices = @transform_2, window_bounds = array<i64: 8, 128>}, {transform_indices = @transform_3, window_bounds = array<i64: 24, 128>}, {transform_indices = @transform_4, window_bounds = array<i64: 8, 128>}]} {
    %c0_i32 = arith.constant 0 : i32
    %0 = arith.cmpi eq, %arg1, %c0_i32 : i32
    %1 = arith.extui %0 : i1 to i32
    %c0_i32_0 = arith.constant 0 : i32
    %2 = arith.cmpi ne, %1, %c0_i32_0 : i32
    scf.if %2 {
      %cst_67 = arith.constant 0.000000e+00 : f32
      %191 = vector.broadcast %cst_67 : f32 to vector<8x128xf32>
      %c0_68 = arith.constant 0 : index
      %c0_69 = arith.constant 0 : index
      %192 = vector.load %arg7[%c0_68, %c0_69] : memref<8x128xf32, #tpu.memory_space<vmem>>, vector<8x128xf32>
      tpu.vector_store %arg7[%c0_68, %c0_69], %191 {strides = array<i32>} : memref<8x128xf32, #tpu.memory_space<vmem>>, vector<8x128xf32>,
    } else {
    }
    %c0 = arith.constant 0 : index
    %c0_1 = arith.constant 0 : index
    %3 = vector.load %arg3[%c0, %c0_1] : memref<32x128xf32, #tpu.memory_space<vmem>>, vector<8x128xf32>
    %c8 = arith.constant 8 : index
    %c0_2 = arith.constant 0 : index
    %4 = vector.load %arg3[%c8, %c0_2] : memref<32x128xf32, #tpu.memory_space<vmem>>, vector<8x128xf32>
    %c16 = arith.constant 16 : index
    %c0_3 = arith.constant 0 : index
    %5 = vector.load %arg3[%c16, %c0_3] : memref<32x128xf32, #tpu.memory_space<vmem>>, vector<8x128xf32>
    %c24 = arith.constant 24 : index
    %c0_4 = arith.constant 0 : index
    %6 = vector.load %arg3[%c24, %c0_4] : memref<32x128xf32, #tpu.memory_space<vmem>>, vector<8x128xf32>
    %c0_5 = arith.constant 0 : index
    %c0_6 = arith.constant 0 : index
    %7 = vector.load %arg4[%c0_5, %c0_6] : memref<40x128xf32, #tpu.memory_space<vmem>>, vector<8x128xf32>
    %c8_7 = arith.constant 8 : index
    %c0_8 = arith.constant 0 : index
    %8 = vector.load %arg4[%c8_7, %c0_8] : memref<40x128xf32, #tpu.memory_space<vmem>>, vector<8x128xf32>
    %c16_9 = arith.constant 16 : index
    %c0_10 = arith.constant 0 : index
    %9 = vector.load %arg4[%c16_9, %c0_10] : memref<40x128xf32, #tpu.memory_space<vmem>>, vector<8x128xf32>
    %c24_11 = arith.constant 24 : index
    %c0_12 = arith.constant 0 : index
    %10 = vector.load %arg4[%c24_11, %c0_12] : memref<40x128xf32, #tpu.memory_space<vmem>>, vector<8x128xf32>
    %c32 = arith.constant 32 : index
    %c0_13 = arith.constant 0 : index
    %11 = vector.load %arg4[%c32, %c0_13] : memref<40x128xf32, #tpu.memory_space<vmem>>, vector<8x128xf32>
    %c0_14 = arith.constant 0 : index
    %c0_15 = arith.constant 0 : index
    %12 = vector.load %arg5[%c0_14, %c0_15] : memref<8x128xf32, #tpu.memory_space<vmem>>, vector<8x128xf32>
    %c1_i32 = arith.constant 1 : i32
    %13 = arith.muli %arg0, %c1_i32 : i32
    %14 = arith.addi %13, %arg1 : i32
    %15 = tpu.iota {dimensions = array<i32: 1>} : vector<8x128xi32>
    %16 = tpu.iota {dimensions = array<i32: 0>} : vector<8x128xi32>
    %c128_i32 = arith.constant 128 : i32
    %17 = arith.muli %14, %c128_i32 : i32
    %18 = vector.broadcast %17 : i32 to vector<8x128xi32>
    %19 = arith.addi %18, %15 : vector<8x128xi32>
    %c8_i32 = arith.constant 8 : i32
    %20 = vector.broadcast %c8_i32 : i32 to vector<8x128xi32>
    %21 = arith.muli %19, %20 : vector<8x128xi32>
    %22 = arith.addi %21, %16 : vector<8x128xi32>
    %c160_i32 = arith.constant 160 : i32
    %23 = vector.broadcast %c160_i32 : i32 to vector<8x128xi32>
    %24 = arith.cmpi slt, %22, %23 : vector<8x128xi32>
    %c1_i32_16 = arith.constant 1 : i32
    %25 = arith.muli %arg0, %c1_i32_16 : i32
    %26 = arith.addi %25, %arg1 : i32
    %27 = arith.sitofp %26 : i32 to f32
    %28 = arith.sitofp %15 : vector<8x128xi32> to vector<8x128xf32>
    %29 = arith.sitofp %16 : vector<8x128xi32> to vector<8x128xf32>
    %cst = arith.constant 5.000000e+00 : f32
    %30 = arith.divf %27, %cst : f32
    %31 = math.floor %30 : f32
    %cst_17 = arith.constant 5.000000e+00 : f32
    %32 = arith.mulf %cst_17, %31 : f32
    %33 = arith.subf %27, %32 : f32
    %cst_18 = arith.constant 3.000000e+00 : f32
    %34 = arith.mulf %33, %cst_18 : f32
    %35 = vector.broadcast %34 : f32 to vector<8x128xf32>
    %36 = arith.addf %35, %28 : vector<8x128xf32>
    %cst_19 = arith.constant 5.000000e+00 : f32
    %37 = vector.broadcast %cst_19 : f32 to vector<8x128xf32>
    %38 = arith.divf %36, %37 : vector<8x128xf32>
    %39 = math.floor %38 : vector<8x128xf32>
    %cst_20 = arith.constant 5.000000e+00 : f32
    %40 = vector.broadcast %cst_20 : f32 to vector<8x128xf32>
    %41 = arith.mulf %40, %39 : vector<8x128xf32>
    %42 = arith.subf %36, %41 : vector<8x128xf32>
    %cst_21 = arith.constant 3.000000e+00 : f32
    %43 = vector.broadcast %cst_21 : f32 to vector<8x128xf32>
    %44 = arith.mulf %43, %42 : vector<8x128xf32>
    %45 = arith.addf %44, %29 : vector<8x128xf32>
    %cst_22 = arith.constant 5.000000e+00 : f32
    %46 = vector.broadcast %cst_22 : f32 to vector<8x128xf32>
    %47 = arith.divf %45, %46 : vector<8x128xf32>
    %48 = math.floor %47 : vector<8x128xf32>
    %cst_23 = arith.constant 5.000000e+00 : f32
    %49 = vector.broadcast %cst_23 : f32 to vector<8x128xf32>
    %50 = arith.mulf %49, %48 : vector<8x128xf32>
    %51 = arith.subf %45, %50 : vector<8x128xf32>
    %cst_24 = arith.constant 5.000000e-01 : f32
    %52 = vector.broadcast %cst_24 : f32 to vector<8x128xf32>
    %53 = arith.cmpf olt, %51, %52 : vector<8x128xf32>
    %cst_25 = arith.constant 1.500000e+00 : f32
    %54 = vector.broadcast %cst_25 : f32 to vector<8x128xf32>
    %55 = arith.cmpf olt, %51, %54 : vector<8x128xf32>
    %cst_26 = arith.constant 2.500000e+00 : f32
    %56 = vector.broadcast %cst_26 : f32 to vector<8x128xf32>
    %57 = arith.cmpf olt, %51, %56 : vector<8x128xf32>
    %cst_27 = arith.constant 3.500000e+00 : f32
    %58 = vector.broadcast %cst_27 : f32 to vector<8x128xf32>
    %59 = arith.cmpf olt, %51, %58 : vector<8x128xf32>
    %cst_28 = arith.constant 9.47111988 : f32
    %cst_29 = arith.constant 1.123640e+01 : f32
    %60 = vector.broadcast %cst_28 : f32 to vector<8x128xf32>
    %61 = vector.broadcast %cst_29 : f32 to vector<8x128xf32>
    %62 = arith.select %59, %60, %61 : vector<8x128xi1>, vector<8x128xf32>
    %cst_30 = arith.constant 5.055870e+00 : f32
    %63 = vector.broadcast %cst_30 : f32 to vector<8x128xf32>
    %64 = arith.select %57, %63, %62 : vector<8x128xi1>, vector<8x128xf32>
    %cst_31 = arith.constant 3.192750e+00 : f32
    %65 = vector.broadcast %cst_31 : f32 to vector<8x128xf32>
    %66 = arith.select %55, %65, %64 : vector<8x128xi1>, vector<8x128xf32>
    %cst_32 = arith.constant 1.322100e+00 : f32
    %67 = vector.broadcast %cst_32 : f32 to vector<8x128xf32>
    %68 = arith.select %53, %67, %66 : vector<8x128xi1>, vector<8x128xf32>
    %cst_33 = arith.constant 4.840530e+00 : f32
    %cst_34 = arith.constant 1.000710e+01 : f32
    %69 = vector.broadcast %cst_33 : f32 to vector<8x128xf32>
    %70 = vector.broadcast %cst_34 : f32 to vector<8x128xf32>
    %71 = arith.select %59, %69, %70 : vector<8x128xi1>, vector<8x128xf32>
    %cst_35 = arith.constant 8.09891986 : f32
    %72 = vector.broadcast %cst_35 : f32 to vector<8x128xf32>
    %73 = arith.select %57, %72, %71 : vector<8x128xi1>, vector<8x128xf32>
    %cst_36 = arith.constant 4.009440e+00 : f32
    %74 = vector.broadcast %cst_36 : f32 to vector<8x128xf32>
    %75 = arith.select %55, %74, %73 : vector<8x128xi1>, vector<8x128xf32>
    %cst_37 = arith.constant 1.731450e+00 : f32
    %76 = vector.broadcast %cst_37 : f32 to vector<8x128xf32>
    %77 = arith.select %53, %76, %75 : vector<8x128xi1>, vector<8x128xf32>
    %78 = arith.mulf %5, %68 : vector<8x128xf32>
    %79 = math.sqrt %78 : vector<8x128xf32>
    %80 = arith.mulf %6, %77 : vector<8x128xf32>
    %81 = math.sqrt %80 : vector<8x128xf32>
    %82 = arith.subf %3, %7 : vector<8x128xf32>
    %83 = arith.mulf %82, %11 : vector<8x128xf32>
    %84 = arith.subf %4, %8 : vector<8x128xf32>
    %85 = arith.mulf %84, %11 : vector<8x128xf32>
    %86 = arith.subf %79, %9 : vector<8x128xf32>
    %87 = arith.mulf %86, %11 : vector<8x128xf32>
    %88 = arith.subf %81, %10 : vector<8x128xf32>
    %89 = arith.mulf %88, %11 : vector<8x128xf32>
    %90 = arith.mulf %83, %83 : vector<8x128xf32>
    %91 = arith.mulf %85, %85 : vector<8x128xf32>
    %92 = arith.addf %90, %91 : vector<8x128xf32>
    %93 = arith.mulf %87, %87 : vector<8x128xf32>
    %94 = arith.addf %92, %93 : vector<8x128xf32>
    %95 = arith.mulf %89, %89 : vector<8x128xf32>
    %96 = arith.addf %94, %95 : vector<8x128xf32>
    %97 = arith.addf %3, %79 : vector<8x128xf32>
    %98 = arith.addf %4, %81 : vector<8x128xf32>
    %99 = arith.addf %7, %9 : vector<8x128xf32>
    %100 = arith.addf %8, %10 : vector<8x128xf32>
    %101 = arith.mulf %79, %81 : vector<8x128xf32>
    %102 = arith.mulf %9, %10 : vector<8x128xf32>
    %103 = arith.minimumf %97, %99 : vector<8x128xf32>
    %104 = arith.maximumf %3, %7 : vector<8x128xf32>
    %105 = arith.subf %103, %104 : vector<8x128xf32>
    %cst_38 = arith.constant 0.000000e+00 : f32
    %106 = vector.broadcast %cst_38 : f32 to vector<8x128xf32>
    %107 = arith.maximumf %105, %106 : vector<8x128xf32>
    %108 = arith.minimumf %98, %100 : vector<8x128xf32>
    %109 = arith.maximumf %4, %8 : vector<8x128xf32>
    %110 = arith.subf %108, %109 : vector<8x128xf32>
    %cst_39 = arith.constant 0.000000e+00 : f32
    %111 = vector.broadcast %cst_39 : f32 to vector<8x128xf32>
    %112 = arith.maximumf %110, %111 : vector<8x128xf32>
    %113 = arith.mulf %107, %112 : vector<8x128xf32>
    %114 = arith.addf %101, %102 : vector<8x128xf32>
    %115 = arith.subf %114, %113 : vector<8x128xf32>
    %cst_40 = arith.constant 1.000000e+00 : f32
    %116 = vector.broadcast %cst_40 : f32 to vector<8x128xf32>
    %117 = arith.select %24, %115, %116 : vector<8x128xi1>, vector<8x128xf32>
    %118 = tpu.reciprocal %117 : vector<8x128xf32> -> vector<8x128xf32>
    %119 = arith.mulf %113, %118 : vector<8x128xf32>
    %cst_41 = arith.constant 0.000000e+00 : f32
    %120 = vector.broadcast %cst_41 : f32 to vector<8x128xf32>
    %121 = arith.select %24, %119, %120 : vector<8x128xi1>, vector<8x128xf32>
    %cst_42 = arith.constant 5.000000e-01 : f32
    %122 = vector.broadcast %cst_42 : f32 to vector<8x128xf32>
    %123 = arith.mulf %122, %11 : vector<8x128xf32>
    %cst_43 = arith.constant 5.000000e-01 : f32
    %124 = vector.broadcast %cst_43 : f32 to vector<8x128xf32>
    %125 = arith.addf %124, %123 : vector<8x128xf32>
    %126 = arith.subf %12, %121 : vector<8x128xf32>
    %127 = arith.mulf %126, %125 : vector<8x128xf32>
    %128 = arith.mulf %127, %127 : vector<8x128xf32>
    %c0_i32_44 = arith.constant 0 : i32
    %129 = vector.broadcast %c0_i32_44 : i32 to vector<8x128xi32>
    %c0_i32_45 = arith.constant 0 : i32
    %130 = vector.broadcast %c0_i32_45 : i32 to vector<8x128xi32>
    %131 = arith.cmpi sge, %22, %130 : vector<8x128xi32>
    %c80_i32 = arith.constant 80 : i32
    %132 = vector.broadcast %c80_i32 : i32 to vector<8x128xi32>
    %133 = arith.cmpi slt, %22, %132 : vector<8x128xi32>
    %134 = arith.andi %131, %133 : vector<8x128xi1>
    %c0_46 = arith.constant 0 : index
    %135 = memref.load %arg2[%c0_46] : memref<2xi32, #tpu.memory_space<smem>>
    %136 = vector.broadcast %135 : i32 to vector<8x128xi32>
    %137 = arith.select %134, %136, %129 : vector<8x128xi1>, vector<8x128xi32>
    %c80_i32_47 = arith.constant 80 : i32
    %138 = vector.broadcast %c80_i32_47 : i32 to vector<8x128xi32>
    %139 = arith.cmpi sge, %22, %138 : vector<8x128xi32>
    %c160_i32_48 = arith.constant 160 : i32
    %140 = vector.broadcast %c160_i32_48 : i32 to vector<8x128xi32>
    %141 = arith.cmpi slt, %22, %140 : vector<8x128xi32>
    %142 = arith.andi %139, %141 : vector<8x128xi1>
    %c1 = arith.constant 1 : index
    %143 = memref.load %arg2[%c1] : memref<2xi32, #tpu.memory_space<smem>>
    %144 = vector.broadcast %143 : i32 to vector<8x128xi32>
    %145 = arith.select %142, %144, %137 : vector<8x128xi1>, vector<8x128xi32>
    %cst_49 = arith.constant 0.000000e+00 : f32
    %146 = vector.broadcast %cst_49 : f32 to vector<8x128xf32>
    %c1_i32_50 = arith.constant 1 : i32
    %147 = vector.broadcast %c1_i32_50 : i32 to vector<8x128xi32>
    %148 = arith.andi %145, %147 : vector<8x128xi32>
    %c0_i32_51 = arith.constant 0 : i32
    %149 = vector.broadcast %c0_i32_51 : i32 to vector<8x128xi32>
    %150 = arith.cmpi ne, %148, %149 : vector<8x128xi32>
    %151 = arith.extui %150 : vector<8x128xi1> to vector<8x128xi32>
    %152 = arith.sitofp %151 : vector<8x128xi32> to vector<8x128xf32>
    %c0_52 = arith.constant 0 : index
    %c0_53 = arith.constant 0 : index
    %153 = vector.load %arg6[%c0_52, %c0_53] : memref<24x128xf32, #tpu.memory_space<vmem>>, vector<8x128xf32>
    %154 = arith.subf %153, %152 : vector<8x128xf32>
    %155 = arith.mulf %154, %11 : vector<8x128xf32>
    %156 = arith.mulf %155, %155 : vector<8x128xf32>
    %157 = arith.addf %146, %156 : vector<8x128xf32>
    %c2_i32 = arith.constant 2 : i32
    %158 = vector.broadcast %c2_i32 : i32 to vector<8x128xi32>
    %159 = arith.andi %145, %158 : vector<8x128xi32>
    %c0_i32_54 = arith.constant 0 : i32
    %160 = vector.broadcast %c0_i32_54 : i32 to vector<8x128xi32>
    %161 = arith.cmpi ne, %159, %160 : vector<8x128xi32>
    %162 = arith.extui %161 : vector<8x128xi1> to vector<8x128xi32>
    %163 = arith.sitofp %162 : vector<8x128xi32> to vector<8x128xf32>
    %c8_55 = arith.constant 8 : index
    %c0_56 = arith.constant 0 : index
    %164 = vector.load %arg6[%c8_55, %c0_56] : memref<24x128xf32, #tpu.memory_space<vmem>>, vector<8x128xf32>
    %165 = arith.subf %164, %163 : vector<8x128xf32>
    %166 = arith.mulf %165, %11 : vector<8x128xf32>
    %167 = arith.mulf %166, %166 : vector<8x128xf32>
    %168 = arith.addf %157, %167 : vector<8x128xf32>
    %c4_i32 = arith.constant 4 : i32
    %169 = vector.broadcast %c4_i32 : i32 to vector<8x128xi32>
    %170 = arith.andi %145, %169 : vector<8x128xi32>
    %c0_i32_57 = arith.constant 0 : i32
    %171 = vector.broadcast %c0_i32_57 : i32 to vector<8x128xi32>
    %172 = arith.cmpi ne, %170, %171 : vector<8x128xi32>
    %173 = arith.extui %172 : vector<8x128xi1> to vector<8x128xi32>
    %174 = arith.sitofp %173 : vector<8x128xi32> to vector<8x128xf32>
    %c16_58 = arith.constant 16 : index
    %c0_59 = arith.constant 0 : index
    %175 = vector.load %arg6[%c16_58, %c0_59] : memref<24x128xf32, #tpu.memory_space<vmem>>, vector<8x128xf32>
    %176 = arith.subf %175, %174 : vector<8x128xf32>
    %177 = arith.mulf %176, %11 : vector<8x128xf32>
    %178 = arith.mulf %177, %177 : vector<8x128xf32>
    %179 = arith.addf %168, %178 : vector<8x128xf32>
    %c0_60 = arith.constant 0 : index
    %c0_61 = arith.constant 0 : index
    %180 = vector.load %arg7[%c0_60, %c0_61] : memref<8x128xf32, #tpu.memory_space<vmem>>, vector<8x128xf32>
    %cst_62 = arith.constant 7.812500e-03 : f32
    %181 = vector.broadcast %cst_62 : f32 to vector<8x128xf32>
    %182 = arith.mulf %181, %96 : vector<8x128xf32>
    %cst_63 = arith.constant 6.250000e-03 : f32
    %183 = vector.broadcast %cst_63 : f32 to vector<8x128xf32>
    %184 = arith.mulf %183, %128 : vector<8x128xf32>
    %185 = arith.addf %182, %184 : vector<8x128xf32>
    %cst_64 = arith.constant 0.00208333344 : f32
    %186 = vector.broadcast %cst_64 : f32 to vector<8x128xf32>
    %187 = arith.mulf %186, %179 : vector<8x128xf32>
    %188 = arith.addf %185, %187 : vector<8x128xf32>
    %189 = arith.addf %180, %188 : vector<8x128xf32>
    %c0_65 = arith.constant 0 : index
    %c0_66 = arith.constant 0 : index
    %190 = vector.load %arg7[%c0_65, %c0_66] : memref<8x128xf32, #tpu.memory_space<vmem>>, vector<8x128xf32>
    tpu.vector_store %arg7[%c0_65, %c0_66], %189 {strides = array<i32>} : memref<8x128xf32, #tpu.memory_space<vmem>>, vector<8x128xf32>,
    return
  }
  func.func @transform_0(%arg0: i32, %arg1: i32, %arg2: memref<2xi32, #tpu.memory_space<smem>>) -> (i32, i32) {
    %c1_i32 = arith.constant 1 : i32
    %0 = arith.muli %arg0, %c1_i32 : i32
    %1 = arith.addi %0, %arg1 : i32
    %c0_i32 = arith.constant 0 : i32
    %c0_i32_0 = arith.constant 0 : i32
    return %c0_i32, %1 : i32, i32
  }
  func.func @transform_1(%arg0: i32, %arg1: i32, %arg2: memref<2xi32, #tpu.memory_space<smem>>) -> (i32, i32) {
    %c1_i32 = arith.constant 1 : i32
    %0 = arith.muli %arg0, %c1_i32 : i32
    %1 = arith.addi %0, %arg1 : i32
    %c0_i32 = arith.constant 0 : i32
    %c0_i32_0 = arith.constant 0 : i32
    return %c0_i32, %1 : i32, i32
  }
  func.func @transform_2(%arg0: i32, %arg1: i32, %arg2: memref<2xi32, #tpu.memory_space<smem>>) -> (i32, i32) {
    %c1_i32 = arith.constant 1 : i32
    %0 = arith.muli %arg0, %c1_i32 : i32
    %1 = arith.addi %0, %arg1 : i32
    %c0_i32 = arith.constant 0 : i32
    %c0_i32_0 = arith.constant 0 : i32
    return %c0_i32, %1 : i32, i32
  }
  func.func @transform_3(%arg0: i32, %arg1: i32, %arg2: memref<2xi32, #tpu.memory_space<smem>>) -> (i32, i32) {
    %c1_i32 = arith.constant 1 : i32
    %0 = arith.muli %arg0, %c1_i32 : i32
    %1 = arith.addi %0, %arg1 : i32
    %c0_i32 = arith.constant 0 : i32
    %c0_i32_0 = arith.constant 0 : i32
    return %c0_i32, %1 : i32, i32
  }
  func.func @transform_4(%arg0: i32, %arg1: i32, %arg2: memref<2xi32, #tpu.memory_space<smem>>) -> (i32, i32) {
    %c0_i32 = arith.constant 0 : i32
    %c0_i32_0 = arith.constant 0 : i32
    return %arg0, %c0_i32 : i32, i32
  }
}

</mosaic_0001>

<bundles_post_ra>
// kernel: yolo_v2_loss.1
= control target key start
LH: loop header
LB: loop body
LE: loop exit
PB: predicated region body
PF: predicated region fallthrough
CT: control target
= control target key end

     0   :  { %s425_s0 = inlined_call_operand.vmem [shape: s32[2], index: 0, kind: input, shape index: {}]   ;;  %s426_s1 = inlined_call_operand.vmem [shape: f32[32,128], index: 1, kind: input, shape index: {}]   ;;  %s427_s2 = inlined_call_operand.vmem [shape: f32[40,128], index: 2, kind: input, shape index: {}]   ;;  %s428_s3 = inlined_call_operand.vmem [shape: f32[8,128], index: 3, kind: input, shape index: {}]   ;;  %s429_s4 = inlined_call_operand.vmem [shape: f32[24,128], index: 4, kind: input, shape index: {}]   ;;  %s430_s5 = inlined_call_operand.vmem [shape: f32[8,128], index: 5, kind: output, shape index: {}]  }
   0x1   :  { %s10_s20 = sshll.u32 %s425_s0, 4  ;;  %s11_s20 = int_to_ptr.vmem [resolvable:$true] %s10_s20 }
   0x2   :  { %s298_s21 = scalar_lea.vmem %s11_s20, 16  ;;  %p303_p1 = scmp.lt.s32.totalorder %s11_s20, %s11_s20 }
   0x3   :  { %p299_p0 = scmp.ne.s32.totalorder %s11_s20, %s298_s21  ;;  %p304_p2 = scmp.lt.s32.totalorder %s298_s21, %s298_s21 }
   0x5   :  { %p305_p3 = por %p304_p2, %p303_p1 }
   0x7   :  { %p306_p4 = pnand %p305_p3, %p299_p0 }
   0x9   :  { %309 = shalt.err (!%p306_p4)  }
   0xa   :  { %s312_s22 = smov [#allocation3]  }
   0xb   :  { %13 = dma.vmem_to_smem %s11_s20, 16, %s312_s22, [#allocation2] }
   0xc   :  { %310 = dma.done.wait [#allocation2], 16 }
   0xd   :  { %311 = vsyncadd [#allocation2], 4294967280 }
   0xe   :  { %15 = sfence }
   0xf   :  { %v108_v0 = vlaneseq  ;;  %v313_v15 = vmov 11.2364   ;;  %v314_v17 = vmov 10.0071   ;;  %v99_v19 = vld [vmem:[%s426_s1 + $0x10] sm:$0xff]  ;;  %v100_v20 = vld [vmem:[%s426_s1 + $0x18] sm:$0xff] }
  0x10   :  { %s213_s26 = sld [smem:[#allocation3]]  ;;  %s357_s27 = sld [smem:[#allocation3 + $0x1]]  ;;  %v101_v32 = vld [vmem:[%s427_s2] sm:$0xff]  ;;  %v367_v33 = vld [vmem:[%s427_s2 + $0x10] sm:$0xff]  ;;  %v102_v38 = vld [vmem:[%s427_s2 + $0x8] sm:$0xff] }
  0x11   :  { %v109_v1 = vand.u32 127, %v108_v0  ;;  %v111_v4 = vshrl.u32 %v108_v0, 7  ;;  %v380_v39 = vld [vmem:[%s427_s2 + $0x18] sm:$0xff]  ;;  %v97_v42 = vld [vmem:[%s426_s1] sm:$0xff]  ;;  %v98_v44 = vld [vmem:[%s426_s1 + $0x8] sm:$0xff]  ;;  %v186_v46 = vadd.f32 %v367_v33, %v101_v32 }
  0x12   :  { %v187_v51 = vadd.f32 %v380_v39, %v102_v38  ;;  %v191_v54 = vmax.f32 %v97_v42, %v101_v32  ;;  %v195_v56 = vmax.f32 %v98_v44, %v102_v38  ;;  %v189_v60 = vmul.f32 %v380_v39, %v367_v33 }
  0x13   :  { %v119_v2 = vcvt.s32.f32 %v109_v1  ;;  %v120_v7 = vcvt.s32.f32 %v111_v4  ;;  %v115_v29 = vmul.u32 8, %v109_v1 }
  0x15   :  { %v131_v3 = vmul.f32 0.2, %v119_v2  ;;  %v355_v30 = vadd.s32 %v115_v29, %v111_v4 }
  0x16   :  { %v214_v36 = vstv %s213_s26  ;;  %v219_v48 = vstv %s357_s27 }
  0x17   :  { %v132_v5 = vfloor.f32 %v131_v3  ;;  %vm210_vm4 = vcmp.ge.s32.totalorder %v355_v30, 0  ;;  %vm211_vm5 = vcmp.lt.s32.totalorder %v355_v30, 80  ;;  %vm216_vm8 = vcmp.ge.s32.totalorder %v355_v30, 80 }
  0x18   :  { %vm369_vm7 = vmand %vm210_vm4, %vm211_vm5  ;;  %vm117_vm11 = vcmp.lt.s32.totalorder %v355_v30, 160  ;;  %v169_v3 = vsub.f32 %v97_v42, %v101_v32 }
  0x19   :  { %v133_v6 = vmul.f32 5.0, %v132_v5  ;;  %v215_v47 = vsel %vm369_vm7, %v214_v36, 0  ;;  %vm217_vm13 = vmand %vm216_vm8, %vm117_vm11 }
  0x1a   :  { %v220_v57 = vsel %vm217_vm13, %v219_v48, %v215_v47 }
  0x1b   :  { %v134_v8 = vsub.f32 %v119_v2, %v133_v6  ;;  %v221_v63 = vand.u32 1, %v220_v57  ;;  %v230_v0 = vand.u32 2, %v220_v57  ;;  %v171_v6 = vsub.f32 %v98_v44, %v102_v38 }
  0x1d   :  { %v135_v9 = vmul.f32 3.0, %v134_v8  ;;  %vm222_vm14 = vcmp.ne.s32.totalorder %v221_v63, 0  ;;  %vm231_vm15 = vcmp.ne.s32.totalorder %v230_v0, 0  ;;  %v105_v8 = vld [vmem:[%s427_s2 + $0x20] sm:$0xff] }
  0x1e   :  { %v205_v35 = vmul.f32 0.5, %v105_v8 }
  0x1f   :  { %v136_v10 = vadd.f32 %v135_v9, %v120_v7  ;;  %v239_v7 = vand.u32 4, %v220_v57 }
  0x21   :  { %v137_v11 = vmul.f32 0.2, %v136_v10 }
  0x23   :  { %v138_v12 = vfloor.f32 %v137_v11  ;;  %v315_v11 = vmov 0.0  }
  0x25   :  { %v139_v13 = vmul.f32 5.0, %v138_v12  ;;  %v285_v12 = vsel %vm222_vm14, 1.0, %v315_v11 }
  0x27   :  { %v140_v14 = vsub.f32 %v136_v10, %v139_v13  ;;  %v225_v13 = vld [vmem:[%s429_s4] sm:$0xff] }
  0x29   :  { %vm142_vm0 = vcmp.lt.f32.partialorder %v140_v14, 1.5  ;;  %vm143_vm1 = vcmp.lt.f32.partialorder %v140_v14, 2.5  ;;  %vm144_vm2 = vcmp.lt.f32.partialorder %v140_v14, 3.5  ;;  %vm141_vm3 = vcmp.lt.f32.partialorder %v140_v14, 0.5 }
  0x2a   :  { %v145_v16 = vsel %vm144_vm2, 9.47112, %v313_v15  ;;  %v149_v18 = vsel %vm144_vm2, 4.84053, %v314_v17  ;;  %v286_v14 = vsel %vm231_vm15, 1.0, %v315_v11  ;;  %v234_v15 = vld [vmem:[%s429_s4 + $0x8] sm:$0xff]  ;;  %v172_v17 = vmul.f32 %v171_v6, %v105_v8 }
  0x2b   :  { %v146_v21 = vsel %vm143_vm1, 5.05587, %v145_v16  ;;  %v150_v22 = vsel %vm143_vm1, 8.09892, %v149_v18  ;;  %v170_v16 = vmul.f32 %v169_v3, %v105_v8 }
  0x2c   :  { %v147_v23 = vsel %vm142_vm0, 3.19275, %v146_v21  ;;  %v151_v24 = vsel %vm142_vm0, 4.00944, %v150_v22  ;;  %vm240_vm0 = vcmp.ne.s32.totalorder %v239_v7, 0  ;;  %v235_v21 = vsub.f32 %v234_v15, %v286_v14 }
  0x2d   :  { %v148_v25 = vsel %vm141_vm3, 1.3221, %v147_v23  ;;  %v152_v26 = vsel %vm141_vm3, 1.73145, %v151_v24  ;;  %v287_v22 = vsel %vm240_vm0, 1.0, %v315_v11  ;;  %v243_v23 = vld [vmem:[%s429_s4 + $0x10] sm:$0xff] }
  0x2e   :  { %v153_v27 = vmul.f32 %v148_v25, %v99_v19  ;;  %v161_v28 = vmul.f32 %v152_v26, %v100_v20  ;;  %v226_v20 = vsub.f32 %v225_v13, %v285_v12  ;;  %v177_v26 = vmul.f32 %v170_v16, %v170_v16 }
  0x2f   :  { %v236_v29 = vmul.f32 %v235_v21, %v105_v8 }
  0x30   :  { %292 = vrsqrt.f32 %v153_v27  ;;  %vm156_vm6 = vcmp.eq.f32.partialorder %v153_v27, inf  ;;  %v159_v34 = vand.u32 2147483648, %v153_v27  ;;  %vm158_vm9 = vcmp.eq.f32.partialorder %v153_v27, 0.0 }
  0x31   :  { %294 = vrsqrt.f32 %v161_v28  ;;  %vm164_vm10 = vcmp.eq.f32.partialorder %v161_v28, inf  ;;  %v167_v41 = vand.u32 2147483648, %v161_v28  ;;  %vm166_vm12 = vcmp.eq.f32.partialorder %v161_v28, 0.0 }
  0x3a   :  { %v293_v31 = vpop.eup %292 }
  0x3b   :  { %v295_v37 = vpop.eup %294  ;;  %v155_v40 = vmul.f32 %v293_v31, %v153_v27  ;;  %v244_v31 = vsub.f32 %v243_v23, %v287_v22 }
  0x3c   :  { %v163_v43 = vmul.f32 %v295_v37, %v161_v28  ;;  %v237_v37 = vmul.f32 %v236_v29, %v236_v29 }
  0x3d   :  { %v157_v45 = vsel %vm156_vm6, %v153_v27, %v155_v40  ;;  %v178_v27 = vmul.f32 %v172_v17, %v172_v17  ;;  %v245_v38 = vmul.f32 %v244_v31, %v105_v8 }
  0x3e   :  { %v160_v49 = vsel %vm158_vm9, %v159_v34, %v157_v45  ;;  %v165_v50 = vsel %vm164_vm10, %v161_v28, %v163_v43  ;;  %v227_v28 = vmul.f32 %v226_v20, %v105_v8  ;;  %v106_v43 = vld [vmem:[%s428_s3] sm:$0xff] }
  0x3f   :  { %v168_v52 = vsel %vm166_vm12, %v167_v41, %v165_v50  ;;  %v184_v53 = vadd.f32 %v160_v49, %v97_v42  ;;  %v173_v18 = vsub.f32 %v160_v49, %v367_v33  ;;  %v179_v33 = vadd.f32 %v178_v27, %v177_v26 }
  0x40   :  { %v185_v55 = vadd.f32 %v168_v52, %v98_v44  ;;  %v188_v59 = vmul.f32 %v168_v52, %v160_v49  ;;  %v175_v25 = vsub.f32 %v168_v52, %v380_v39  ;;  %v228_v36 = vmul.f32 %v227_v28, %v227_v28 }
  0x41   :  { %v190_v58 = vmin.f32 %v184_v53, %v186_v46  ;;  %v174_v24 = vmul.f32 %v173_v18, %v105_v8  ;;  %v206_v44 = vadd.f32 0.5, %v205_v35  ;;  %v246_v46 = vmul.f32 %v245_v38, %v245_v38 }
  0x42   :  { %v194_v61 = vmin.f32 %v185_v55, %v187_v51  ;;  %v199_v5 = vadd.f32 %v189_v60, %v188_v59  ;;  %v176_v32 = vmul.f32 %v175_v25, %v105_v8  ;;  %v238_v45 = vadd.f32 %v237_v37, %v228_v36 }
  0x43   :  { %v192_v62 = vsub.f32 %v190_v58, %v191_v54  ;;  %v180_v34 = vmul.f32 %v174_v24, %v174_v24 }
  0x44   :  { %v196_v1 = vsub.f32 %v194_v61, %v195_v56  ;;  %v182_v42 = vmul.f32 %v176_v32, %v176_v32  ;;  %v247_v51 = vadd.f32 %v246_v46, %v238_v45 }
  0x45   :  { %v193_v2 = vmax.f32 %v192_v62, 0.0  ;;  %v181_v41 = vadd.f32 %v180_v34, %v179_v33 }
  0x46   :  { %v197_v4 = vmax.f32 %v196_v1, 0.0  ;;  %v252_v55 = vmul.f32 0.0020833334, %v247_v51 }
  0x47   :  { %v183_v48 = vadd.f32 %v182_v42, %v181_v41 }
  0x48   :  { %v198_v9 = vmul.f32 %v197_v4, %v193_v2 }
  0x49   :  { %v249_v53 = vmul.f32 0.0078125, %v183_v48 }
  0x4a   :  { %v200_v10 = vsub.f32 %v199_v5, %v198_v9 }
  0x4c   :  { %v201_v19 = vsel %vm117_vm11, %v200_v10, 1.0 }
  0x4d   :  { %296 = vrcp.f32 %v201_v19 }
  0x57   :  { %v297_v40 = vpop.eup %296 }
  0x58   :  { %v203_v39 = vmul.f32 %v297_v40, %v198_v9 }
  0x5a   :  { %v204_v47 = vsel %vm117_vm11, %v203_v39, 0.0 }
  0x5b   :  { %v207_v49 = vsub.f32 %v106_v43, %v204_v47 }
  0x5d   :  { %v208_v50 = vmul.f32 %v207_v49, %v206_v44 }
  0x5f   :  { %v209_v52 = vmul.f32 %v208_v50, %v208_v50 }
  0x61   :  { %v250_v54 = vmul.f32 0.00625, %v209_v52 }
  0x63   :  { %v251_v56 = vadd.f32 %v250_v54, %v249_v53 }
  0x65   :  { %v253_v57 = vadd.f32 %v252_v55, %v251_v56 }
  0x67   :  { %255 = vst [vmem:[%s430_s5] sm:$0xff] %v253_v57 }

</bundles_post_ra>
